<compile_context>
chip_gen: v7x
topology: tpu7x:2x2x1
jax: 0.10.0
libtpu: 0.0.40
codegen_flags: <defaults>
</compile_context>

<pallas_src>
import functools

import jax
import jax.numpy as jnp
from jax.experimental import pallas as pl
from jax.experimental.pallas import tpu as pltpu


# ------------------------------ Pallas kernel -------------------------------

def _fsm_kernel(x_ref, wa_ref, wc_ref, o_ref, *, inv_hw):
    # x_ref : (C, HWp)  f32   one image, channels on sublanes, pixels on lanes
    # wa_ref: (C, C)    f32   conv_atten weight (1x1, bias-free)
    # wc_ref: (Co, C)   bf16  conv weight (1x1, bias-free)
    # o_ref : (Co, HWp) f32
    x = x_ref[...]

    # conv_atten(avgpool(x)) == avgpool(conv_atten(x))  (both linear):
    # lane-dense MXU matmul, then a lane reduction (padded columns are zero,
    # divide by the true H*W).
    s = jnp.dot(wa_ref[...], x, preferred_element_type=jnp.float32)   # (C, HWp)
    atten = jax.nn.sigmoid(jnp.sum(s, axis=-1, keepdims=True) * inv_hw)  # (C, 1)

    # feat = x * atten ; x = x + feat  ->  y = x * (1 + atten)
    y = x * (1.0 + atten)                                             # (C, HWp)

    # final 1x1 conv: (Co, C) @ (C, HWp), bf16 MXU inputs, f32 accumulation.
    out = jnp.dot(wc_ref[...], y.astype(jnp.bfloat16),
                  preferred_element_type=jnp.float32)                 # (Co, HWp)
    o_ref[...] = out.astype(o_ref.dtype)


# -------------------------------- wrapper ------------------------------------

def feature_selection_module(x, w_atten, w_conv):
    """x: (B, Cin, H, W) f32; w_atten: (Cin, Cin, 1, 1); w_conv: (Cout, Cin, 1, 1)."""
    B, C, H, W = x.shape
    Co = w_conv.shape[0]
    HW = H * W

    # Keep NCHW native: pixels on the lane axis.  Pad lanes to a 128 multiple
    # only when needed (zero-padding is harmless: it adds 0 to the pooled sum
    # and produces zero output columns that we slice off).
    xr = x.reshape(B, C, HW)
    pad = (-HW) % 128
    if pad:
        xr = jnp.pad(xr, ((0, 0), (0, 0), (0, pad)))
    HWp = HW + pad

    wa = w_atten.reshape(C, C).astype(jnp.float32)
    wc = w_conv.reshape(Co, C).astype(jnp.bfloat16)     # host-side bf16 weight prep

    kernel = functools.partial(_fsm_kernel, inv_hw=1.0 / float(HW))
    out = pl.pallas_call(
        kernel,
        out_shape=jax.ShapeDtypeStruct((B, Co, HWp), jnp.float32),
        grid=(B,),
        in_specs=[
            pl.BlockSpec((None, C, HWp), lambda b: (b, 0, 0)),   # x slab (streamed)
            pl.BlockSpec((C, C), lambda b: (0, 0)),              # conv_atten weight
            pl.BlockSpec((Co, C), lambda b: (0, 0)),             # conv weight
        ],
        out_specs=pl.BlockSpec((None, Co, HWp), lambda b: (b, 0, 0)),
        compiler_params=pltpu.CompilerParams(
            dimension_semantics=("parallel",)),
    )(xr, wa, wc)

    if pad:
        out = out[:, :, :HW]
    return out.reshape(B, Co, H, W)


# --------------------------- pure-JAX reference ------------------------------

def _ref_forward(x, w_atten, w_conv):
    pooled = jnp.mean(x, axis=(2, 3))                                  # (B, C)
    atten = jax.nn.sigmoid(
        jnp.einsum("oc,bc->bo", w_atten[:, :, 0, 0], pooled,
                   precision=jax.lax.Precision.HIGHEST))               # (B, C)
    y = x * (1.0 + atten[:, :, None, None])                            # x + x*atten
    return jnp.einsum("oc,bchw->bohw", w_conv[:, :, 0, 0], y,
                      precision=jax.lax.Precision.HIGHEST)


# ---------------------------------- main -------------------------------------

if __name__ == "__main__":
    B, Cin, Cout, H, W = 2, 4, 8, 16, 16
    key = jax.random.PRNGKey(0)
    kx, ka, kc = jax.random.split(key, 3)
    x = jax.random.normal(kx, (B, Cin, H, W), jnp.float32)
    w_atten = jax.random.normal(ka, (Cin, Cin, 1, 1), jnp.float32) / float(Cin) ** 0.5
    w_conv = jax.random.normal(kc, (Cout, Cin, 1, 1), jnp.float32) / float(Cin) ** 0.5

    out = jax.jit(feature_selection_module)(x, w_atten, w_conv)
    out = jax.block_until_ready(out)

    ref = _ref_forward(x, w_atten, w_conv)
    assert out.shape == (B, Cout, H, W)
    max_err = float(jnp.max(jnp.abs(out - ref)))
    assert bool(jnp.allclose(out, ref, atol=2e-2, rtol=2e-2)), max_err
    print("KERNEL_OK")
</pallas_src>

<mosaic_0001>
module attributes {stable_mosaic.version = 11 : i64} {
  func.func @_fsm_kernel(%arg0: i32, %arg1: memref<1x4x256xf32, #tpu.memory_space<vmem>>, %arg2: memref<4x4xf32, #tpu.memory_space<vmem>>, %arg3: memref<8x4xbf16, #tpu.memory_space<vmem>>, %arg4: memref<1x8x256xf32, #tpu.memory_space<vmem>>) attributes {dimension_semantics = [#tpu.dimension_semantics<parallel>], iteration_bounds = array<i64: 2>, scalar_prefetch = 0 : i64, scratch_operands = 0 : i64, tpu.core_type = #tpu.core_type<tc>, window_params = [{transform_indices = @transform_0, window_bounds = array<i64: 1, 4, 256>}, {pipeline_mode = #tpu.pipeline_mode<synchronous>, transform_indices = @transform_1, window_bounds = array<i64: 4, 4>}, {pipeline_mode = #tpu.pipeline_mode<synchronous>, transform_indices = @transform_2, window_bounds = array<i64: 8, 4>}, {transform_indices = @transform_3, window_bounds = array<i64: 1, 8, 256>}]} {
    %c0 = arith.constant 0 : index
    %c0_0 = arith.constant 0 : index
    %c0_1 = arith.constant 0 : index
    %0 = vector.load %arg1[%c0, %c0_0, %c0_1] : memref<1x4x256xf32, #tpu.memory_space<vmem>>, vector<1x4x256xf32>
    %1 = vector.shape_cast %0 : vector<1x4x256xf32> to vector<4x256xf32>
    %c0_2 = arith.constant 0 : index
    %c0_3 = arith.constant 0 : index
    %2 = vector.load %arg2[%c0_2, %c0_3] : memref<4x4xf32, #tpu.memory_space<vmem>>, vector<4x4xf32>
    %cst = arith.constant dense<0.000000e+00> : vector<4x256xf32>
    %3 = tpu.matmul %2, %1, %cst {dimension_numbers = #tpu.dot_dimension_numbers<[1], [0], [0], [1], [0, 0, 1, 1], [], []>} : vector<4x4xf32>, vector<4x256xf32>, vector<4x256xf32> -> vector<4x256xf32>
    %cst_4 = arith.constant dense<0.000000e+00> : vector<4xf32>
    %4 = vector.multi_reduction <add>, %3, %cst_4 [1] : vector<4x256xf32> to vector<4xf32>
    %5 = vector.shape_cast %4 : vector<4xf32> to vector<4x1xf32>
    %cst_5 = arith.constant 3.906250e-03 : f32
    %6 = vector.broadcast %cst_5 : f32 to vector<4x1xf32>
    %7 = arith.mulf %5, %6 : vector<4x1xf32>
    %8 = arith.negf %7 : vector<4x1xf32>
    %9 = math.exp %8 : vector<4x1xf32>
    %cst_6 = arith.constant 1.000000e+00 : f32
    %10 = vector.broadcast %cst_6 : f32 to vector<4x1xf32>
    %11 = arith.addf %10, %9 : vector<4x1xf32>
    %12 = arith.divf %10, %11 : vector<4x1xf32>
    %cst_7 = arith.constant 1.000000e+00 : f32
    %13 = vector.broadcast %cst_7 : f32 to vector<4x1xf32>
    %14 = arith.addf %13, %12 : vector<4x1xf32>
    %15 = vector.broadcast %14 : vector<4x1xf32> to vector<4x256xf32>
    %16 = arith.mulf %1, %15 : vector<4x256xf32>
    %c0_8 = arith.constant 0 : index
    %c0_9 = arith.constant 0 : index
    %17 = vector.load %arg3[%c0_8, %c0_9] : memref<8x4xbf16, #tpu.memory_space<vmem>>, vector<8x4xbf16>
    %18 = arith.truncf %16 : vector<4x256xf32> to vector<4x256xbf16>
    %cst_10 = arith.constant dense<0.000000e+00> : vector<8x256xf32>
    %19 = tpu.matmul %17, %18, %cst_10 {dimension_numbers = #tpu.dot_dimension_numbers<[1], [0], [0], [1], [0, 0, 1, 1], [], []>} : vector<8x4xbf16>, vector<4x256xbf16>, vector<8x256xf32> -> vector<8x256xf32>
    %c0_11 = arith.constant 0 : index
    %c0_12 = arith.constant 0 : index
    %c0_13 = arith.constant 0 : index
    %20 = vector.load %arg4[%c0_11, %c0_12, %c0_13] : memref<1x8x256xf32, #tpu.memory_space<vmem>>, vector<1x8x256xf32>
    %21 = vector.shape_cast %20 : vector<1x8x256xf32> to vector<8x256xf32>
    %22 = vector.shape_cast %19 : vector<8x256xf32> to vector<1x8x256xf32>
    tpu.vector_store %arg4[%c0_11, %c0_12, %c0_13], %22 {strides = array<i32>} : memref<1x8x256xf32, #tpu.memory_space<vmem>>, vector<1x8x256xf32>,
    return
  }
  func.func @transform_0(%arg0: i32) -> (i32, i32, i32) {
    %c0_i32 = arith.constant 0 : i32
    %c0_i32_0 = arith.constant 0 : i32
    %c0_i32_1 = arith.constant 0 : i32
    return %arg0, %c0_i32, %c0_i32_0 : i32, i32, i32
  }
  func.func @transform_1(%arg0: i32) -> (i32, i32) {
    %c0_i32 = arith.constant 0 : i32
    %c0_i32_0 = arith.constant 0 : i32
    %c0_i32_1 = arith.constant 0 : i32
    return %c0_i32, %c0_i32_0 : i32, i32
  }
  func.func @transform_2(%arg0: i32) -> (i32, i32) {
    %c0_i32 = arith.constant 0 : i32
    %c0_i32_0 = arith.constant 0 : i32
    %c0_i32_1 = arith.constant 0 : i32
    return %c0_i32, %c0_i32_0 : i32, i32
  }
  func.func @transform_3(%arg0: i32) -> (i32, i32, i32) {
    %c0_i32 = arith.constant 0 : i32
    %c0_i32_0 = arith.constant 0 : i32
    %c0_i32_1 = arith.constant 0 : i32
    return %arg0, %c0_i32, %c0_i32_0 : i32, i32, i32
  }
}

</mosaic_0001>

<bundles_post_ra>
// kernel: feature_selection_module.1
= control target key start
LH: loop header
LB: loop body
LE: loop exit
PB: predicated region body
PF: predicated region fallthrough
CT: control target
= control target key end

     0   :  { %s459_s12 = smov 0   ;;  %s488_s0 = inlined_call_operand.vmem [shape: f32[2,4,256], index: 0, kind: input, shape index: {}]   ;;  %s489_s1 = inlined_call_operand.vmem [shape: f32[4,4], index: 1, kind: input, shape index: {}]   ;;  %s490_s2 = inlined_call_operand.vmem [shape: bf16[8,4], index: 2, kind: input, shape index: {}]   ;;  %s491_s3 = inlined_call_operand.vmem [shape: f32[2,8,256], index: 3, kind: output, shape index: {}]  }
   0x1 LB: > { %s393_s13 = sadd.s32 4294967295, %s434_s12   ;;  %p397_p0 = scmp.ge.s32.totalorder %s434_s12, 1  ;;  %s434_s12 = sphi %s459_s12, %s13_s12  }
   0x2   : > { %p137_p1 = scmp.lt.s32.totalorder %s434_s12, 3 }
   0x4   : > { %p138_p2 = pnand %p397_p0, %p137_p1 }
   0x5   : > { %p161_p3 = scmp.lt.s32.totalorder (!%p138_p2), %s393_s13, 1  ;;  %v436_v0 = vmov (!%p138_p2), 0.0   ;;  %vm180_vm0 = vcmask (!%p138_p2), 1043456   ;;  %v173_v3 = vld [vmem:[%s489_s1] sm:$0xf] (!%p138_p2)  ;;  %vm176_vm1 = vcmask (!%p138_p2), 31744   ;;  %v273_v17 = vlaneseq (!%p138_p2) }
   0x6   : > { %141 = sbr.rel (%p138_p2) target bundleno = 636 (0x27c), region = 32  ;;  %249 = vmatprep.mubr.f32.mxu0 (!%p138_p2), %v436_v0  ;;  %v437_v9 = vmov (!%p138_p2), 0   ;;  %v438_v15 = vmov (!%p138_p2), 839922192   ;;  %vm288_vm2 = vcmask (!%p138_p2), 1041408  }
   0x7   : > { %327 = vmatprep.mubr.bf16.mxu1 (!%p138_p2), %v437_v9  ;;  %v271_v16 = vunpack.c.l.s4 (!%p138_p2), %v438_v15  ;;  %v274_v19 = vshrl.u32 (!%p138_p2), %v273_v17, 7  ;;  %v279_v29 = vld [vmem:[%s490_s2] sm:$0xf] (!%p138_p2) }
   0x9   : > { %v272_v18 = vunpack.c.0.s8 (!%p138_p2), %v271_v16 }
   0xb   : > { %v275_v20 = vsub.s32 (!%p138_p2), %v272_v18, %v274_v19 }
   0xd   : > { %s493_s13 = smov (!%p161_p3, %s393_s13), 1 }
   0xe   : > { %s410_s14 = sshll.u32 %s493_s13, 3  ;;  %s411_s22 = sshll.u32 %s493_s13, 4 }
   0xf   : > { %s165_s17 = scalar_lea.vmem %s488_s0, %s410_s14  ;;  %s170_s25 = scalar_lea.vmem %s491_s3, %s411_s22 }
  0x10   : > { %v172_v1 = vld [vmem:[%s165_s17] sm:$0xff] }
  0x11   : > { %v175_v2 = vcombine.high %v172_v1, %v172_v1 }
  0x13   : > { %402 = vmatprep.subr.msk.mxu0 %vm180_vm0, %v175_v2 }
  0x14   : > { %403 = vmatpush1.msk.msra.mxu0 %vm180_vm0, %v172_v1 }
  0x15   : > { %404 = vmatmul.mubr.msk.f32.vlgmr.msra.gmra.mrb[0].mxu0 %vm176_vm1, %v173_v3 }
  0xe8   : > { %v251_v4 = vpop.f32.mrb[0].mxu0 }
  0xe9   : > { %v256_v5 = vsel %vm180_vm0, %v251_v4, 0.0  ;;  %v253_v6 = vpop.f32.mrb[1].mxu0 }
  0xea   : > { %v257_v7 = vsel %vm180_vm0, %v253_v6, 0.0 }
  0xeb   : > { %v258_v8 = vadd.f32 %v257_v7, %v256_v5 }
  0xed   : > { %259 = vadd.xlane.f32.xlu0 %v258_v8 }
 0x17a   : > { %v260_v10 = vpop.xlane.xlu0 %259 }
 0x17b   : > { %v405_v11 = vmul.f32 -0.00390625, %v260_v10 }
 0x17d   : > { %v263_v12 = vmul.f32 1.442695, %v405_v11 }
 0x17f   : > { %424 = vpow2.f32 %v263_v12 }
 0x189   : > { %v425_v13 = vpop.eup %424 }
 0x18a   : > { %v265_v14 = vadd.f32 1.0, %v425_v13 }
 0x18c   : > { %426 = vrcp.f32 %v265_v14 }
 0x196   : > { %v427_v21 = vpop.eup %426 }
 0x197   : > { %v268_v22 = vadd.f32 1.0, %v427_v21 }
 0x199   : > { %v276_v23 = vrot.slane %v268_v22, %v275_v20 }
 0x19b   : > { %v278_v24 = vmul.f32 %v276_v23, %v172_v1 }
 0x19d   : > { %v281_v25 = vcombine.high %v278_v24, %v278_v24  ;;  %v283_v26 = vpack.c.bf16 %v278_v24, %v278_v24 }
 0x19f   : > { %v284_v27 = vpack.c.bf16 %v281_v25, %v281_v25  ;;  %v290_v28 = vsel %vm288_vm2, %v283_v26, 0 }
 0x1a1   : > { %406 = vmatprep.subr.msk.bf16.mxu1 %vm288_vm2, %v284_v27 }
 0x1a2   : > { %296 = vmatpush1.bf16.msra.mxu1 %v290_v28 }
 0x1a5   : > { %407 = vmatmul.mubr.msk.bf16.vlgmr.msra.gmra.mrb[0].mxu1 %vm176_vm1, %v279_v29 }
 0x278   : > { %v329_v30 = vpop.f32.mrb[0].mxu1 }
 0x279   : > { %336 = vst [vmem:[%s170_s25] sm:$0xff] %v329_v30  ;;  %v331_v31 = vpop.f32.mrb[1].mxu1 }
 0x27a   : > { %337 = vst [vmem:[%s170_s25 + $0x8] sm:$0xff] %v331_v31  ;;  %v333_v32 = vpop.f32.mrb[2].mxu1 }
 0x27b   : > { %v334_v33 = vpop.f32.mrb[3].mxu1 }
 0x27c PF: > { %s13_s12 = sadd.s32 1, %s434_s12  }
 0x27d   : > { %p10_p4 = scmp.ge.s32.totalorder %s13_s12, 4  }
 0x27f   :  { %12 = sbr.rel (!%p10_p4) target bundleno = 1 (0x1), region = 62 }

</bundles_post_ra>
